<compile_context>
chip_gen: v7x
topology: tpu7x:2x2x1
jax: 0.10.0
libtpu: 0.0.40
codegen_flags: <defaults>
</compile_context>

<pallas_src>
import functools
import math

import jax
import jax.numpy as jnp
from jax.experimental import pallas as pl
from jax.experimental.pallas import tpu as pltpu


def _round_up(x: int, m: int) -> int:
    return (x + m - 1) // m * m


def lora_kernel(x_ref, a_ref, b_ref, o_ref):
    # Cast the streamed-in x tile to bf16 (no-op if x is already bf16).
    x = x_ref[...].astype(jnp.bfloat16)
    # down = x @ A^T : (tm, rank_p).  bf16 operands, f32 accumulation on the MXU.
    down = jnp.dot(x, a_ref[...], preferred_element_type=jnp.float32)
    # up = down @ (scaling * B)^T : (tm, Dout).  Scaling already folded into b_ref.
    up = jnp.dot(down.astype(jnp.bfloat16), b_ref[...],
                 preferred_element_type=jnp.float32)
    o_ref[...] = up.astype(o_ref.dtype)


@functools.partial(jax.jit, static_argnames=("alpha", "rank", "drop_rate", "tile_m"))
def lora_forward(x, w_down, w_up, *, alpha, rank, drop_rate=0.0, tile_m=512):
    """x: (B, S, Din).  w_down: (rank, Din).  w_up: (Dout, rank)."""
    # TODO(synk): training-mode dropout (drop_rate > 0) would use pltpu.prng_* in-kernel;
    # with drop_rate == 0.0 (this module's hot path) dropout is the identity.
    assert drop_rate == 0.0
    B, S, Din = x.shape
    Dout = w_up.shape[0]
    assert w_down.shape == (rank, Din) and w_up.shape == (Dout, rank)
    scaling = alpha / rank
    out_dtype = x.dtype

    M = B * S
    x2 = x.reshape(M, Din)  # row-major reshape: free, no copy

    # Tiny weights: pad rank up to a sublane multiple (zeros contribute nothing),
    # fold the LoRA scaling into B^T once, cast both to bf16 for the MXU.
    rank_p = max(_round_up(rank, 8), 8)
    a_t = jnp.zeros((Din, rank_p), jnp.bfloat16).at[:, :rank].set(
        w_down.astype(jnp.bfloat16).T)                                   # (Din, rank_p)
    b_t = jnp.zeros((rank_p, Dout), jnp.bfloat16).at[:rank, :].set(
        (w_up.astype(jnp.float32) * scaling).astype(jnp.bfloat16).T)     # (rank_p, Dout)

    # --- tile-M selection -----------------------------------------------------
    itemsize_x = jnp.dtype(x.dtype).itemsize
    itemsize_o = jnp.dtype(out_dtype).itemsize
    row_bytes = Din * itemsize_x + Dout * itemsize_o
    # Keep the double-buffered x+out tiles under ~26 MiB (vmem_limit_bytes=32 MiB
    # below works on every generation: v5e/v6e 128 MiB physical, v7x 64 MiB).
    vmem_budget = 26 << 20
    tm_cap = max((vmem_budget // (2 * row_bytes)) // 8 * 8, 8)
    tm = max((min(tile_m, tm_cap) // 8) * 8, 8)
    if M <= tm:
        tm = M                      # single tile: block dim == full array dim
    else:
        # At least 2 grid steps so both v7x TensorCores get work; multiple of 8.
        tm = min(tm, _round_up(pl.cdiv(M, 2), 8))
    grid_m = pl.cdiv(M, tm)
    # ---------------------------------------------------------------------------

    cost = pl.CostEstimate(
        flops=2 * M * rank_p * (Din + Dout),
        transcendentals=0,
        bytes_accessed=(M * Din * itemsize_x + M * Dout * itemsize_o
                        + a_t.size * 2 + b_t.size * 2),
    )

    out = pl.pallas_call(
        lora_kernel,
        out_shape=jax.ShapeDtypeStruct((M, Dout), out_dtype),
        grid=(grid_m,),
        in_specs=[
            pl.BlockSpec((tm, Din), lambda i: (i, 0)),       # x streamed at native dtype
            pl.BlockSpec((Din, rank_p), lambda i: (0, 0)),   # A^T (bf16), VMEM resident
            pl.BlockSpec((rank_p, Dout), lambda i: (0, 0)),  # scaled B^T (bf16), resident
        ],
        out_specs=pl.BlockSpec((tm, Dout), lambda i: (i, 0)),
        compiler_params=pltpu.CompilerParams(
            dimension_semantics=("parallel",),
            vmem_limit_bytes=32 << 20),
        cost_estimate=cost,
    )(x2, a_t, b_t)

    return out.reshape(B, S, Dout)


def lora_reference(x, w_down, w_up, *, alpha, rank):
    # pure-JAX f32 reference matching the PyTorch module
    down = jnp.einsum("bsd,rd->bsr", x, w_down)
    up = jnp.einsum("bsr,or->bso", down, w_up)
    return up * (alpha / rank)


def lora_reference_matched(x, w_down, w_up, *, alpha, rank):
    # Same precision path as the kernel: x, A -> bf16; f32 accumulation;
    # `down` rounded to bf16; B pre-scaled then rounded to bf16.
    xb = x.astype(jnp.bfloat16).astype(jnp.float32)
    ab = w_down.astype(jnp.bfloat16).astype(jnp.float32)
    down = jnp.einsum("bsd,rd->bsr", xb, ab)
    down_b = down.astype(jnp.bfloat16).astype(jnp.float32)
    bb = (w_up.astype(jnp.float32) * (alpha / rank)).astype(jnp.bfloat16).astype(jnp.float32)
    up = jnp.einsum("bsr,or->bso", down_b, bb)
    return up.astype(x.dtype)


if __name__ == "__main__":
    # Small shapes consistent with the module's forward: (batch, seq, hidden)
    batch, seq, din, dout, rank, alpha = 2, 8, 32, 32, 4, 4

    key = jax.random.PRNGKey(0)
    k_x, k_a, k_b = jax.random.split(key, 3)

    x = jax.random.normal(k_x, (batch, seq, din), dtype=jnp.float32)

    # lora_down: kaiming_uniform_(a=sqrt(5)) -> bound = 1/sqrt(fan_in)
    bound = 1.0 / math.sqrt(din)
    w_down = jax.random.uniform(k_a, (rank, din), jnp.float32, -bound, bound)
    # NOTE: the module inits lora_up to zeros (output would be trivially 0);
    # use small random values here so the kernel math is actually exercised.
    w_up = jax.random.uniform(k_b, (dout, rank), jnp.float32, -0.1, 0.1)

    y = lora_forward(x, w_down, w_up, alpha=alpha, rank=rank)
    y = jax.block_until_ready(y)
    assert y.shape == (batch, seq, dout)
    assert y.dtype == x.dtype

    y_match = lora_reference_matched(x, w_down, w_up, alpha=alpha, rank=rank)
    y_f32 = lora_reference(x, w_down, w_up, alpha=alpha, rank=rank)
    # tight check against the precision-matched reference, loose check vs full f32
    assert jnp.allclose(y, y_match, atol=1e-3, rtol=1e-3)
    assert jnp.allclose(y, y_f32, atol=5e-2, rtol=5e-2)

    print("KERNEL_OK")
</pallas_src>

<mosaic_0001>
module attributes {stable_mosaic.version = 11 : i64} {
  func.func @lora_kernel(%arg0: i32, %arg1: memref<16x32xf32, #tpu.memory_space<vmem>>, %arg2: memref<32x8xbf16, #tpu.memory_space<vmem>>, %arg3: memref<8x32xbf16, #tpu.memory_space<vmem>>, %arg4: memref<16x32xf32, #tpu.memory_space<vmem>>) attributes {dimension_semantics = [#tpu.dimension_semantics<parallel>], iteration_bounds = array<i64: 1>, scalar_prefetch = 0 : i64, scratch_operands = 0 : i64, tpu.core_type = #tpu.core_type<tc>, window_params = [{transform_indices = @transform_0, window_bounds = array<i64: 16, 32>}, {pipeline_mode = #tpu.pipeline_mode<synchronous>, transform_indices = @transform_1, window_bounds = array<i64: 32, 8>}, {pipeline_mode = #tpu.pipeline_mode<synchronous>, transform_indices = @transform_2, window_bounds = array<i64: 8, 32>}, {transform_indices = @transform_3, window_bounds = array<i64: 16, 32>}]} {
    %c0 = arith.constant 0 : index
    %c0_0 = arith.constant 0 : index
    %0 = vector.load %arg1[%c0, %c0_0] : memref<16x32xf32, #tpu.memory_space<vmem>>, vector<16x32xf32>
    %1 = arith.truncf %0 : vector<16x32xf32> to vector<16x32xbf16>
    %c0_1 = arith.constant 0 : index
    %c0_2 = arith.constant 0 : index
    %2 = vector.load %arg2[%c0_1, %c0_2] : memref<32x8xbf16, #tpu.memory_space<vmem>>, vector<32x8xbf16>
    %cst = arith.constant dense<0.000000e+00> : vector<16x8xf32>
    %3 = tpu.matmul %1, %2, %cst {dimension_numbers = #tpu.dot_dimension_numbers<[1], [0], [0], [1], [0, 0, 1, 1], [], []>} : vector<16x32xbf16>, vector<32x8xbf16>, vector<16x8xf32> -> vector<16x8xf32>
    %4 = arith.truncf %3 : vector<16x8xf32> to vector<16x8xbf16>
    %c0_3 = arith.constant 0 : index
    %c0_4 = arith.constant 0 : index
    %5 = vector.load %arg3[%c0_3, %c0_4] : memref<8x32xbf16, #tpu.memory_space<vmem>>, vector<8x32xbf16>
    %cst_5 = arith.constant dense<0.000000e+00> : vector<16x32xf32>
    %6 = tpu.matmul %4, %5, %cst_5 {dimension_numbers = #tpu.dot_dimension_numbers<[1], [0], [0], [1], [0, 0, 1, 1], [], []>} : vector<16x8xbf16>, vector<8x32xbf16>, vector<16x32xf32> -> vector<16x32xf32>
    %c0_6 = arith.constant 0 : index
    %c0_7 = arith.constant 0 : index
    %7 = vector.load %arg4[%c0_6, %c0_7] : memref<16x32xf32, #tpu.memory_space<vmem>>, vector<16x32xf32>
    tpu.vector_store %arg4[%c0_6, %c0_7], %6 {strides = array<i32>} : memref<16x32xf32, #tpu.memory_space<vmem>>, vector<16x32xf32>,
    return
  }
  func.func @transform_0(%arg0: i32) -> (i32, i32) {
    %c0_i32 = arith.constant 0 : i32
    %c0_i32_0 = arith.constant 0 : i32
    return %arg0, %c0_i32 : i32, i32
  }
  func.func @transform_1(%arg0: i32) -> (i32, i32) {
    %c0_i32 = arith.constant 0 : i32
    %c0_i32_0 = arith.constant 0 : i32
    %c0_i32_1 = arith.constant 0 : i32
    return %c0_i32, %c0_i32_0 : i32, i32
  }
  func.func @transform_2(%arg0: i32) -> (i32, i32) {
    %c0_i32 = arith.constant 0 : i32
    %c0_i32_0 = arith.constant 0 : i32
    %c0_i32_1 = arith.constant 0 : i32
    return %c0_i32, %c0_i32_0 : i32, i32
  }
  func.func @transform_3(%arg0: i32) -> (i32, i32) {
    %c0_i32 = arith.constant 0 : i32
    %c0_i32_0 = arith.constant 0 : i32
    return %arg0, %c0_i32 : i32, i32
  }
}

</mosaic_0001>

<bundles_post_ra>
// kernel: lora_forward.1
= control target key start
LH: loop header
LB: loop body
LE: loop exit
PB: predicated region body
PF: predicated region fallthrough
CT: control target
= control target key end

     0   :  { %v203_v1 = vmov 0.0   ;;  %vm204_vm0 = vmmov 0   ;;  %s258_s0 = inlined_call_operand.vmem [shape: f32[16,32], index: 0, kind: input, shape index: {}]   ;;  %s259_s1 = inlined_call_operand.vmem [shape: bf16[32,8], index: 1, kind: input, shape index: {}]   ;;  %s260_s2 = inlined_call_operand.vmem [shape: bf16[8,32], index: 2, kind: input, shape index: {}]   ;;  %s261_s3 = inlined_call_operand.hbm [shape: f32[16,32], index: 3, kind: output, shape index: {}]  }
   0x1   :  { %v177_v0 = vld [vmem:[%s259_s1] sm:$0xff]   ;;  %158 = vmatprep.subr.bf16.mxu0 %v203_v1  ;;  %v178_v2 = vld [vmem:[%s259_s1 + $0x8] sm:$0xff]   ;;  %166 = vmatprep.subr.bf16.mxu1 %v203_v1 }
   0x2   :  { %159 = vmatpush3.bf16.msra.mxu0 %v177_v0  ;;  %162 = vmatprep.mubr.msk.bf16.mxu0 %vm204_vm0, %v203_v1  ;;  %v16_v3 = vld [vmem:[%s258_s0] sm:$0xff]  ;;  %v17_v4 = vld [vmem:[%s258_s0 + $0x8] sm:$0xff] }
   0x3   :  { %8 = vsyncpa [#allocation3], 0  ;;  %160 = vmatprep.subr.bf16.mxu0 %v203_v1  ;;  %168 = vmatprep.mubr.msk.bf16.mxu1 %vm204_vm0, %v203_v1  ;;  %v18_v5 = vpack.c.bf16 %v17_v4, %v16_v3  ;;  %vm35_vm1 = vcmask 261120   ;;  %v81_v6 = vld [vmem:[%s260_s2] sm:$0xf]  ;;  %vm86_vm2 = vcmask 1043456  }
   0x4   :  { %v88_v7 = vsel %vm86_vm2, %v81_v6, 0  ;;  %vm82_vm3 = vcmask 64512   ;;  %s205_s0 = smov [#allocation2]  }
   0x5   :  { %167 = vmatpush3.bf16.msra.mxu1 %v88_v7  ;;  %s138_s21 = sshll.u32 %s205_s0, 4  ;;  %s139_s21 = int_to_ptr.vmem [resolvable:$true] %s138_s21 }
   0x6   :  { %161 = vmatpush3.bf16.msra.mxu0 %v178_v2  ;;  %s179_s2 = scalar_lea.vmem %s139_s21, 256  ;;  %p184_p1 = scmp.lt.s32.totalorder %s139_s21, %s139_s21 }
   0x7   :  { %p180_p0 = scmp.ne.s32.totalorder %s139_s21, %s179_s2  ;;  %p185_p2 = scmp.lt.s32.totalorder %s179_s2, %s179_s2 }
   0x9   :  { %163 = vmatmul.mubr.msk.bf16.vlgmr.msra.gmra.mrb[0].mxu0 %vm35_vm1, %v18_v5  ;;  %p186_p3 = por %p185_p2, %p184_p1 }
   0xb   :  { %p187_p4 = pnand %p186_p3, %p180_p0 }
  0xdc   :  { %v73_v8 = vpop.f32.mrb[0].mxu0 }
  0xdd   :  { %v164_v9 = vpop.f32.mrb[1].mxu0 }
  0xde   :  { %v76_v10 = vpop.f32.mrb[2].mxu0 }
  0xdf   :  { %v80_v11 = vpack.c.bf16 %v76_v10, %v73_v8  ;;  %v165_v12 = vpop.f32.mrb[3].mxu0 }
  0xe1   :  { %169 = vmatmul.mubr.msk.bf16.vlgmr.msra.gmra.mrb[0].mxu1 %vm82_vm3, %v80_v11 }
 0x1b4   :  { %v124_v13 = vpop.f32.mrb[0].mxu1 }
 0x1b5   :  { %131 = vst.msk [vmem:[#allocation2] sm:$0xff] %vm35_vm1, %v124_v13  ;;  %v170_v14 = vpop.f32.mrb[1].mxu1 }
 0x1b6   :  { %v127_v15 = vpop.f32.mrb[2].mxu1 }
 0x1b7   :  { %132 = vst.msk [vmem:[#allocation2 + $0x8] sm:$0xff] %vm35_vm1, %v127_v15  ;;  %v171_v16 = vpop.f32.mrb[3].mxu1 }
 0x1b8   :  { %190 = shalt.err (!%p187_p4)
}
 0x1b9   :  { %s191_s24 = scalar_lea.hbm %s261_s3, 256 }
 0x1ba   :  { %p192_p5 = scmp.ne.s32.totalorder %s261_s3, %s191_s24  ;;  %p195_p6 = scmp.lt.u32.totalorder %s191_s24, %s261_s3 }
 0x1bc   :  { %p197_p7 = pnand %p195_p6, %p192_p5 }
 0x1be   :  { %200 = shalt.err (!%p197_p7)
}
 0x1bf   :  { %s206_s29 = smov 128   ;;  %s207_s30 = smov 8  }
 0x1c0   :  { %144 = dma.vmem_to_hbm [thread:$0]  %s139_s21, 256, %s261_s3, [#allocation3], %s206_s29, %s206_s29, %s207_s30  }
 0x1c1   :  { %201 = dma.done.wait [#allocation3], 256  }
 0x1c2   :  { %202 = vsyncadd [#allocation3], 4294967040 }
 0x1c3   :  { %148 = vsyncpa [#allocation3], 1 }

</bundles_post_ra>
